<compile_context>
chip_gen: v7x
topology: tpu7x:2x2x1
jax: 0.10.0
libtpu: 0.0.40
codegen_flags: <defaults>
</compile_context>

<pallas_src>
import functools

import jax
import jax.numpy as jnp
from jax.experimental import pallas as pl
from jax.experimental.pallas import tpu as pltpu


def _round_up(x, m):
    return (x + m - 1) // m * m


# ----------------------------------------------------------------------------
# Kernels
# ----------------------------------------------------------------------------
def _linear_kernel_single_k(x_ref, w_ref, b_ref, o_ref, *,
                            negative_slope, activation):
    # Whole K reduction fits a single tile: no accumulator scratch, no phases.
    y = jnp.dot(x_ref[...], w_ref[...], preferred_element_type=jnp.float32)
    y = y + b_ref[...].astype(jnp.float32)          # (1, tn) broadcasts over rows
    if activation:
        y = jnp.where(y >= 0, y, negative_slope * y)
    o_ref[...] = y.astype(o_ref.dtype)


def _linear_kernel_multi_k(x_ref, w_ref, b_ref, o_ref, acc_ref, *,
                           negative_slope, activation):
    k = pl.program_id(2)

    @pl.when(k == 0)
    def _():
        # Fold the bias add into the accumulator init (the bias tile is
        # resident across the K axis since its index_map ignores k).
        acc_ref[...] = jnp.broadcast_to(
            b_ref[...].astype(jnp.float32), acc_ref.shape)

    # Hot path: MXU matmul accumulation over the K (in_dim) axis, f32 acc.
    acc_ref[...] += jnp.dot(x_ref[...], w_ref[...],
                            preferred_element_type=jnp.float32)

    @pl.when(k == pl.num_programs(2) - 1)
    def _():
        y = acc_ref[...]
        if activation:
            y = jnp.where(y >= 0, y, negative_slope * y)
        o_ref[...] = y.astype(o_ref.dtype)


# ----------------------------------------------------------------------------
# Tiling helpers
# ----------------------------------------------------------------------------
def _vmem_capacity_and_cores():
    """Best-effort (vmem_capacity_bytes, tensorcores_per_chip)."""
    kind = ""
    try:
        kind = jax.devices()[0].device_kind.lower()
    except Exception:
        pass
    n_tc = 2 if ("v7" in kind or "v4" in kind) else 1
    vmem_cap = (64 << 20) if "v7" in kind else (128 << 20)
    try:
        vmem_cap = int(pltpu.get_tpu_info().vmem_capacity_bytes)
    except Exception:
        pass
    return vmem_cap, n_tc


def _pick_tile(dim_padded, align, max_tile):
    """Largest multiple of `align` that divides dim_padded and is <= max_tile."""
    max_tile = max(align, min(max_tile, dim_padded))
    t = (max_tile // align) * align
    while t >= align:
        if dim_padded % t == 0:
            return t
        t -= align
    return align  # dim_padded is a multiple of align by construction


def _shrink_to_budget(tm, tn, tk, Mp, Np, Kp, in_item, out_item, budget, sub_m):
    def footprint(tm_, tn_, tk_):
        return (2 * (tm_ * tk_ + tk_ * tn_) * in_item   # double-buffered x / W
                + 2 * tm_ * tn_ * out_item              # double-buffered output
                + 2 * 8 * tn_ * 4                       # bias tile (8-sublane pad)
                + tm_ * tn_ * 4                         # f32 accumulator scratch
                + (2 << 20))                            # compiler headroom
    while footprint(tm, tn, tk) > budget:
        if tn > 128 and tn >= tm:
            tn = _pick_tile(Np, 128, tn // 2)
        elif tm > sub_m:
            tm = _pick_tile(Mp, sub_m, tm // 2)
        elif tk > 128:
            tk = _pick_tile(Kp, 128, tk // 2)
        else:
            break
    return tm, tn, tk


# ----------------------------------------------------------------------------
# Parameter preparation (hoist pad + cast out of the per-call path)
# ----------------------------------------------------------------------------
def prepare_weight(w, compute_dtype=jnp.bfloat16):
    """Pad (K, N) weight to lane multiples and cast once (inference path)."""
    K, N = w.shape
    Kp, Np = _round_up(K, 128), _round_up(N, 128)
    w = w.astype(compute_dtype)
    if (Kp, Np) != (K, N):
        w = jnp.pad(w, ((0, Kp - K), (0, Np - N)))
    return w


def prepare_bias(b):
    """Pad (N,) bias to a lane multiple, keep f32 (epilogue math stays f32)."""
    N = b.shape[0]
    Np = _round_up(N, 128)
    b = b.astype(jnp.float32)
    if Np != N:
        b = jnp.pad(b, (0, Np - N))
    return b


# ----------------------------------------------------------------------------
# Wrapper
# ----------------------------------------------------------------------------
def linear_layer(x, w, b, *, activation=True, negative_slope=0.2,
                 compute_dtype=jnp.bfloat16, out_dtype=None, out_dim=None,
                 max_tm=512, max_tn=2048, max_tk=512):
    """Pallas equivalent of LinearLayer.forward.

    x: (M, K).  w: (K, N) or pre-prepared (round_up(K,128), round_up(N,128)).
    b: (N,) or pre-prepared (round_up(N,128),).  Pass out_dim when using
    pre-padded weights.  compute_dtype: MXU operand dtype (bf16 default, f32
    accumulation); out_dtype defaults to x.dtype.
    """
    M, K = x.shape
    Kw, Nw = w.shape
    orig_dtype = x.dtype
    out_dtype = jnp.dtype(out_dtype if out_dtype is not None else orig_dtype)
    compute_dtype = jnp.dtype(compute_dtype)

    Kp = _round_up(K, 128)
    N = int(out_dim) if out_dim is not None else Nw
    Np = _round_up(N, 128)
    assert Kw in (K, Kp), "weight K dim must be K or K padded to 128"
    assert Nw in (N, Np), "weight N dim must be N or N padded to 128"
    assert b.shape[0] in (N, Np), "bias must be N or N padded to 128"

    # Packed-sublane granularity for the compute dtype (8 f32 / 16 bf16 / 32 i8).
    sub_m = {4: 8, 2: 16, 1: 32}.get(compute_dtype.itemsize, 8)
    Mp = _round_up(M, sub_m)

    # ---- cast (cheap / no-op if already prepared), then minimal zero-pad ---
    if x.dtype != compute_dtype:
        x = x.astype(compute_dtype)
    if (Mp, Kp) != (M, K):
        x = jnp.pad(x, ((0, Mp - M), (0, Kp - K)))
    if w.dtype != compute_dtype:
        w = w.astype(compute_dtype)
    if w.shape != (Kp, Np):
        w = jnp.pad(w, ((0, Kp - w.shape[0]), (0, Np - w.shape[1])))
    b2d = b.astype(jnp.float32).reshape(1, -1)
    if b2d.shape[1] != Np:
        b2d = jnp.pad(b2d, ((0, 0), (0, Np - b2d.shape[1])))

    # ---- generation-aware VMEM budget & divisor tiles ----------------------
    vmem_cap, n_tc = _vmem_capacity_and_cores()
    budget = max(min(int(vmem_cap * 3 // 4), vmem_cap - (16 << 20)), 24 << 20)

    in_item = compute_dtype.itemsize
    out_item = out_dtype.itemsize

    tm = _pick_tile(Mp, sub_m, max_tm)
    tn = _pick_tile(Np, 128, max_tn)
    tk = _pick_tile(Kp, 128, max_tk)

    # Keep both TensorCores busy on multi-TC chips (v7x): need >=2 parallel blocks.
    if n_tc >= 2 and (Mp // tm) * (Np // tn) < 2:
        if Np >= 256:
            tn = _pick_tile(Np, 128, Np // 2)
        elif Mp >= 2 * sub_m:
            tm = _pick_tile(Mp, sub_m, Mp // 2)

    tm, tn, tk = _shrink_to_budget(tm, tn, tk, Mp, Np, Kp,
                                   in_item, out_item, budget, sub_m)

    grid_m, grid_n, grid_k = Mp // tm, Np // tn, Kp // tk

    if grid_k == 1:
        kernel = functools.partial(_linear_kernel_single_k,
                                   negative_slope=negative_slope,
                                   activation=activation)
        scratch_shapes = []
    else:
        kernel = functools.partial(_linear_kernel_multi_k,
                                   negative_slope=negative_slope,
                                   activation=activation)
        scratch_shapes = [pltpu.VMEM((tm, tn), jnp.float32)]

    cost = pl.CostEstimate(
        flops=2 * M * N * K,
        transcendentals=0,
        bytes_accessed=(Mp * Kp * in_item + Kp * Np * in_item
                        + Np * 4 + Mp * Np * out_item))

    out = pl.pallas_call(
        kernel,
        out_shape=jax.ShapeDtypeStruct((Mp, Np), out_dtype),
        grid_spec=pltpu.PrefetchScalarGridSpec(
            num_scalar_prefetch=0,
            grid=(grid_m, grid_n, grid_k),
            in_specs=[
                pl.BlockSpec((tm, tk), lambda i, j, k: (i, k)),   # x tile
                pl.BlockSpec((tk, tn), lambda i, j, k: (k, j)),   # W tile
                pl.BlockSpec((1, tn), lambda i, j, k: (0, j)),    # bias tile
            ],
            out_specs=pl.BlockSpec((tm, tn), lambda i, j, k: (i, j)),
            scratch_shapes=scratch_shapes,
        ),
        compiler_params=pltpu.CompilerParams(
            dimension_semantics=("parallel", "parallel", "arbitrary"),
            vmem_limit_bytes=int(budget)),
        cost_estimate=cost,
    )(x, w, b2d)

    if (Mp, Np) != (M, N):
        out = out[:M, :N]
    return out


# ----------------------------------------------------------------------------
# Reference & test harness
# ----------------------------------------------------------------------------
def _reference(x, w, b, *, activation=True, negative_slope=0.2):
    y = x @ w + b[None, :]
    if activation:
        y = jnp.where(y >= 0, y, negative_slope * y)
    return y


def _make_inputs(key, M, in_dim, out_dim):
    kx, kw, kb = jax.random.split(key, 3)
    x = jax.random.normal(kx, (M, in_dim), dtype=jnp.float32)
    # nn.Linear-style init: U(-1/sqrt(in_dim), 1/sqrt(in_dim)).
    bound = 1.0 / jnp.sqrt(jnp.float32(in_dim))
    w_torch = jax.random.uniform(kw, (out_dim, in_dim), dtype=jnp.float32,
                                 minval=-bound, maxval=bound)
    b = jax.random.uniform(kb, (out_dim,), dtype=jnp.float32,
                           minval=-bound, maxval=bound)
    return x, w_torch.T, b     # kernel weight layout: (in_dim, out_dim)


if __name__ == "__main__":
    key = jax.random.PRNGKey(0)
    k1, k2 = jax.random.split(key)
    neg = 0.2

    # --- aligned shapes -----------------------------------------------------
    M, in_dim, out_dim = 16, 256, 128
    x, w, b = _make_inputs(k1, M, in_dim, out_dim)
    y_ref = _reference(x, w, b, activation=True, negative_slope=neg)

    # 1) f32 operands, single-K path (tight tolerance).
    y = jax.block_until_ready(linear_layer(x, w, b, negative_slope=neg,
                                           compute_dtype=jnp.float32))
    assert y.shape == (M, out_dim)
    assert jnp.allclose(y, y_ref, atol=1e-5, rtol=1e-5), "mismatch (f32 single-K)"

    # 2) f32 operands, forced multi-K accumulator path.
    y2 = jax.block_until_ready(linear_layer(x, w, b, negative_slope=neg,
                                            compute_dtype=jnp.float32,
                                            max_tk=128))
    assert jnp.allclose(y2, y_ref, atol=1e-5, rtol=1e-5), "mismatch (f32 multi-K)"

    # 3) default bf16 operand path (f32 accumulation), loose tolerance.
    yb = jax.block_until_ready(linear_layer(x, w, b, negative_slope=neg))
    assert jnp.allclose(yb, y_ref, atol=5e-2, rtol=5e-2), "mismatch (bf16)"

    # 4) pre-prepared (pre-cast / pre-padded) weights: per-call pad/cast hoisted.
    wp, bp = prepare_weight(w), prepare_bias(b)
    yp = jax.block_until_ready(linear_layer(x, wp, bp, negative_slope=neg,
                                            out_dim=out_dim))
    assert jnp.allclose(yp, y_ref, atol=5e-2, rtol=5e-2), "mismatch (prepared)"

    # 5) ragged shapes (minimal padding path), bf16 default.
    Mr, in_r, out_r = 13, 200, 100
    xr, wr, br = _make_inputs(k2, Mr, in_r, out_r)
    yr = jax.block_until_ready(linear_layer(xr, wr, br, negative_slope=neg))
    yr_ref = _reference(xr, wr, br, activation=True, negative_slope=neg)
    assert yr.shape == (Mr, out_r)
    assert jnp.allclose(yr, yr_ref, atol=5e-2, rtol=5e-2), "mismatch (ragged)"

    # 6) activation=False path (plain linear), f32 tight.
    yn = jax.block_until_ready(linear_layer(x, w, b, activation=False,
                                            compute_dtype=jnp.float32))
    yn_ref = _reference(x, w, b, activation=False)
    assert jnp.allclose(yn, yn_ref, atol=1e-5, rtol=1e-5), "mismatch (no act)"

    print("KERNEL_OK")
</pallas_src>

<mosaic_0001>
module attributes {stable_mosaic.version = 11 : i64} {
  func.func @_linear_kernel_single_k(%arg0: i32, %arg1: i32, %arg2: i32, %arg3: memref<16x256xf32, #tpu.memory_space<vmem>>, %arg4: memref<256x128xf32, #tpu.memory_space<vmem>>, %arg5: memref<1x128xf32, #tpu.memory_space<vmem>>, %arg6: memref<16x128xf32, #tpu.memory_space<vmem>>) attributes {dimension_semantics = [#tpu.dimension_semantics<parallel>, #tpu.dimension_semantics<parallel>, #tpu.dimension_semantics<arbitrary>], iteration_bounds = array<i64: 1, 1, 1>, scalar_prefetch = 0 : i64, scratch_operands = 0 : i64, tpu.core_type = #tpu.core_type<tc>, window_params = [{transform_indices = @transform_0, window_bounds = array<i64: 16, 256>}, {transform_indices = @transform_1, window_bounds = array<i64: 256, 128>}, {transform_indices = @transform_2, window_bounds = array<i64: 1, 128>}, {transform_indices = @transform_3, window_bounds = array<i64: 16, 128>}]} {
    %c0 = arith.constant 0 : index
    %c0_0 = arith.constant 0 : index
    %0 = vector.load %arg3[%c0, %c0_0] : memref<16x256xf32, #tpu.memory_space<vmem>>, vector<16x256xf32>
    %c0_1 = arith.constant 0 : index
    %c0_2 = arith.constant 0 : index
    %1 = vector.load %arg4[%c0_1, %c0_2] : memref<256x128xf32, #tpu.memory_space<vmem>>, vector<256x128xf32>
    %cst = arith.constant dense<0.000000e+00> : vector<16x128xf32>
    %2 = tpu.matmul %0, %1, %cst {dimension_numbers = #tpu.dot_dimension_numbers<[1], [0], [0], [1], [0, 0, 1, 1], [], []>} : vector<16x256xf32>, vector<256x128xf32>, vector<16x128xf32> -> vector<16x128xf32>
    %c0_3 = arith.constant 0 : index
    %c0_4 = arith.constant 0 : index
    %3 = vector.load %arg5[%c0_3, %c0_4] : memref<1x128xf32, #tpu.memory_space<vmem>>, vector<1x128xf32>
    %4 = vector.broadcast %3 : vector<1x128xf32> to vector<16x128xf32>
    %5 = arith.addf %2, %4 : vector<16x128xf32>
    %cst_5 = arith.constant 0.000000e+00 : f32
    %6 = vector.broadcast %cst_5 : f32 to vector<16x128xf32>
    %7 = arith.cmpf oge, %5, %6 : vector<16x128xf32>
    %cst_6 = arith.constant 2.000000e-01 : f32
    %8 = vector.broadcast %cst_6 : f32 to vector<16x128xf32>
    %9 = arith.mulf %8, %5 : vector<16x128xf32>
    %10 = arith.select %7, %5, %9 : vector<16x128xi1>, vector<16x128xf32>
    %c0_7 = arith.constant 0 : index
    %c0_8 = arith.constant 0 : index
    %11 = vector.load %arg6[%c0_7, %c0_8] : memref<16x128xf32, #tpu.memory_space<vmem>>, vector<16x128xf32>
    tpu.vector_store %arg6[%c0_7, %c0_8], %10 {strides = array<i32>} : memref<16x128xf32, #tpu.memory_space<vmem>>, vector<16x128xf32>,
    return
  }
  func.func @transform_0(%arg0: i32, %arg1: i32, %arg2: i32) -> (i32, i32) {
    %c0_i32 = arith.constant 0 : i32
    return %arg0, %arg2 : i32, i32
  }
  func.func @transform_1(%arg0: i32, %arg1: i32, %arg2: i32) -> (i32, i32) {
    %c0_i32 = arith.constant 0 : i32
    return %arg2, %arg1 : i32, i32
  }
  func.func @transform_2(%arg0: i32, %arg1: i32, %arg2: i32) -> (i32, i32) {
    %c0_i32 = arith.constant 0 : i32
    %c0_i32_0 = arith.constant 0 : i32
    return %c0_i32, %arg1 : i32, i32
  }
  func.func @transform_3(%arg0: i32, %arg1: i32, %arg2: i32) -> (i32, i32) {
    %c0_i32 = arith.constant 0 : i32
    return %arg0, %arg1 : i32, i32
  }
}

</mosaic_0001>

<bundles_post_ra>
// kernel: tpu_custom_call.1
= control target key start
LH: loop header
LB: loop body
LE: loop exit
PB: predicated region body
PF: predicated region fallthrough
CT: control target
= control target key end

     0   :  { %8 = vsyncpa [#allocation3], 0  ;;  %s469_s0 = inlined_call_operand.hbm [shape: f32[16,256], index: 0, kind: input, shape index: {}]   ;;  %s470_s1 = inlined_call_operand.hbm [shape: f32[256,128], index: 1, kind: input, shape index: {}]   ;;  %s471_s2 = inlined_call_operand.hbm [shape: f32[1,128], index: 2, kind: input, shape index: {}]   ;;  %s472_s3 = inlined_call_operand.hbm [shape: f32[16,128], index: 3, kind: output, shape index: {}]  }
   0x1   :  { %9 = vsyncpa [#allocation6], 0 }
   0x2   :  { %10 = vsyncpa [#allocation4], 0  ;;  %s387_s12 = smov [#allocation5]   ;;  %s293_s16 = scalar_lea.hbm %s470_s1, 4096 }
   0x3   :  { %s28_s13 = sshll.u32 %s387_s12, 4  ;;  %p294_p0 = scmp.ne.s32.totalorder %s470_s1, %s293_s16  ;;  %s29_s13 = int_to_ptr.vmem [resolvable:$true] %s28_s13 }
   0x4   :  { %p297_p1 = scmp.lt.u32.totalorder %s293_s16, %s470_s1 }
   0x6   :  { %p299_p2 = pnand %p297_p1, %p294_p0 }
   0x8   :  { %302 = shalt.err (!%p299_p2)
}
   0x9   :  { %s303_s21 = scalar_lea.vmem %s29_s13, 4096  ;;  %p308_p4 = scmp.lt.s32.totalorder %s29_s13, %s29_s13 }
   0xa   :  { %p304_p3 = scmp.ne.s32.totalorder %s29_s13, %s303_s21  ;;  %p309_p5 = scmp.lt.s32.totalorder %s303_s21, %s303_s21 }
   0xc   :  { %p310_p6 = por %p309_p5, %p308_p4 }
   0xe   :  { %p311_p7 = pnand %p310_p6, %p304_p3 }
  0x10   :  { %314 = shalt.err (!%p311_p7)
}
  0x11   :  { %s388_s22 = smov 128   ;;  %s389_s23 = smov 8  }
  0x12   :  { %34 = dma.hbm_to_vmem [thread:$0]  %s470_s1, 4096, %s29_s13, [#allocation6], %s388_s22, %s388_s22, %s389_s23  }
  0x13   :  { %s390_s26 = smov [#allocation2]   ;;  %s315_s30 = scalar_lea.hbm %s469_s0, 512 }
  0x14   :  { %s16_s27 = sshll.u32 %s390_s26, 4  ;;  %p316_p8 = scmp.ne.s32.totalorder %s469_s0, %s315_s30  ;;  %s17_s27 = int_to_ptr.vmem [resolvable:$true] %s16_s27 }
  0x15   :  { %p319_p9 = scmp.lt.u32.totalorder %s315_s30, %s469_s0 }
  0x17   :  { %p321_p10 = pnand %p319_p9, %p316_p8 }
  0x19   :  { %324 = shalt.err (!%p321_p10)
}
  0x1a   :  { %s325_s8 = scalar_lea.vmem %s17_s27, 512  ;;  %p330_p12 = scmp.lt.s32.totalorder %s17_s27, %s17_s27 }
  0x1b   :  { %p326_p11 = scmp.ne.s32.totalorder %s17_s27, %s325_s8  ;;  %p331_p13 = scmp.lt.s32.totalorder %s325_s8, %s325_s8 }
  0x1d   :  { %p332_p0 = por %p331_p13, %p330_p12 }
  0x1f   :  { %p333_p1 = pnand %p332_p0, %p326_p11 }
  0x21   :  { %336 = shalt.err (!%p333_p1)
}
  0x22   :  { %s391_s1 = smov 256   ;;  %s392_s9 = smov 16  }
  0x23   :  { %22 = dma.hbm_to_vmem [thread:$0]  %s469_s0, 512, %s17_s27, [#allocation3], %s391_s1, %s391_s1, %s392_s9  }
  0x24   :  { %s393_s12 = smov [#allocation7]   ;;  %s337_s16 = scalar_lea.hbm %s471_s2, 16 }
  0x25   :  { %s41_s13 = sshll.u32 %s393_s12, 4  ;;  %p338_p2 = scmp.ne.s32.totalorder %s471_s2, %s337_s16  ;;  %s42_s13 = int_to_ptr.vmem [resolvable:$true] %s41_s13 }
  0x26   :  { %p341_p3 = scmp.lt.u32.totalorder %s337_s16, %s471_s2 }
  0x28   :  { %p343_p4 = pnand %p341_p3, %p338_p2 }
  0x2a   :  { %346 = shalt.err (!%p343_p4)
}
  0x2b   :  { %s347_s21 = scalar_lea.vmem %s42_s13, 16  ;;  %s351_s0 = scalar_lea.vmem %s42_s13, 32 }
  0x2c   :  { %p348_p5 = scmp.ne.s32.totalorder %s42_s13, %s347_s21  ;;  %p352_p6 = scmp.lt.s32.totalorder %s42_s13, %s42_s13 }
  0x2d   :  { %p353_p7 = scmp.lt.s32.totalorder %s351_s0, %s347_s21 }
  0x2f   :  { %p354_p8 = por %p353_p7, %p352_p6 }
  0x31   :  { %p355_p9 = pnand %p354_p8, %p348_p5 }
  0x33   :  { %358 = shalt.err (!%p355_p9)
}
  0x34   :  { %44 = dma.hbm_to_vmem [thread:$0]  %s471_s2, 16, %s42_s13, [#allocation6]  }
  0x35   :  { %381 = dma.done.wait [#allocation3], 512  }
  0x36   :  { %382 = vsyncadd [#allocation3], 4294966784 }
  0x37   :  { %383 = dma.done.wait [#allocation6], 4112  }
  0x38   :  { %384 = vsyncadd [#allocation6], 4294963184  ;;  %v74_v0 = vld [vmem:[#allocation5 + $0x80] sm:$0xff]  ;;  %v75_v1 = vld [vmem:[#allocation5 + $0x88] sm:$0xff]  ;;  %s394_s2 = smov [#allocation8]  }
  0x39   :  { %v58_v2 = vld [vmem:[#allocation5] sm:$0xff]  ;;  %v237_v3 = vpack.c.bf16 %v75_v1, %v74_v0  ;;  %v59_v4 = vld [vmem:[#allocation5 + $0x8] sm:$0xff]  ;;  %v76_v5 = vld [vmem:[#allocation5 + $0x90] sm:$0xff]  ;;  %s185_s26 = sshll.u32 %s394_s2, 4  ;;  %s186_s26 = int_to_ptr.vmem [resolvable:$true] %s185_s26 }
  0x3a   :  { %v77_v6 = vld [vmem:[#allocation5 + $0x98] sm:$0xff]  ;;  %v239_v7 = vpack.c.bf16 %v59_v4, %v58_v2  ;;  %v60_v9 = vld [vmem:[#allocation5 + $0x10] sm:$0xff]  ;;  %v78_v11 = vld [vmem:[#allocation5 + $0xa0] sm:$0xff]  ;;  %s359_s27 = scalar_lea.vmem %s186_s26, 256  ;;  %p364_p11 = scmp.lt.s32.totalorder %s186_s26, %s186_s26 }
  0x3b   :  { %v241_v8 = vpack.c.bf16 %v77_v6, %v76_v5  ;;  %v61_v10 = vld [vmem:[#allocation5 + $0x18] sm:$0xff]  ;;  %238 = vmatprep.subr.bf16.mxu0 %v237_v3  ;;  %269 = vmatprep.subr.bf16.mxu1 %v237_v3  ;;  %v79_v12 = vld [vmem:[#allocation5 + $0xa8] sm:$0xff]  ;;  %v62_v15 = vld [vmem:[#allocation5 + $0x20] sm:$0xff]  ;;  %p360_p10 = scmp.ne.s32.totalorder %s186_s26, %s359_s27  ;;  %p365_p12 = scmp.lt.s32.totalorder %s359_s27, %s359_s27 }
  0x3c   :  { %240 = vmatpush3.bf16.msra.mxu0 %v239_v7  ;;  %277 = vmatpush3.bf16.msra.mxu1 %v239_v7  ;;  %v243_v13 = vpack.c.bf16 %v61_v10, %v60_v9  ;;  %v245_v14 = vpack.c.bf16 %v79_v12, %v78_v11  ;;  %v63_v16 = vld [vmem:[#allocation5 + $0x28] sm:$0xff]  ;;  %v80_v17 = vld [vmem:[#allocation5 + $0xb0] sm:$0xff]  ;;  %v81_v18 = vld [vmem:[#allocation5 + $0xb8] sm:$0xff] }
  0x3d   :  { %242 = vmatprep.subr.bf16.mxu0 %v241_v8  ;;  %270 = vmatprep.subr.bf16.mxu1 %v241_v8  ;;  %v247_v19 = vpack.c.bf16 %v63_v16, %v62_v15  ;;  %v249_v20 = vpack.c.bf16 %v81_v18, %v80_v17  ;;  %v64_v21 = vld [vmem:[#allocation5 + $0x30] sm:$0xff]  ;;  %v65_v22 = vld [vmem:[#allocation5 + $0x38] sm:$0xff]  ;;  %v82_v23 = vld [vmem:[#allocation5 + $0xc0] sm:$0xff]  ;;  %p366_p13 = por %p365_p12, %p364_p11 }
  0x3e   :  { %v83_v24 = vld [vmem:[#allocation5 + $0xc8] sm:$0xff]  ;;  %v57_v26 = vld [vmem:[#allocation2 + $0x18] sm:$0xff]  ;;  %v251_v27 = vpack.c.bf16 %v65_v22, %v64_v21  ;;  %v66_v29 = vld [vmem:[#allocation5 + $0x40] sm:$0xff] }
  0x3f   :  { %v55_v25 = vld [vmem:[#allocation2 + $0x8] sm:$0xff]  ;;  %v253_v28 = vpack.c.bf16 %v83_v24, %v82_v23  ;;  %v84_v31 = vld [vmem:[#allocation5 + $0xd0] sm:$0xff]  ;;  %v85_v32 = vld [vmem:[#allocation5 + $0xd8] sm:$0xff]  ;;  %166 = vmatprep.mubr.f32.mxu1 %v57_v26  ;;  %p367_p0 = pnand %p366_p13, %p360_p10 }
  0x40   :  { %244 = vmatpush3.bf16.msra.mxu0 %v243_v13  ;;  %278 = vmatpush3.bf16.msra.mxu1 %v243_v13  ;;  %v67_v30 = vld [vmem:[#allocation5 + $0x48] sm:$0xff]  ;;  %v257_v34 = vpack.c.bf16 %v85_v32, %v84_v31  ;;  %v68_v35 = vld [vmem:[#allocation5 + $0x50] sm:$0xff]  ;;  %v69_v36 = vld [vmem:[#allocation5 + $0x58] sm:$0xff] }
  0x41   :  { %246 = vmatprep.subr.bf16.mxu0 %v245_v14  ;;  %271 = vmatprep.subr.bf16.mxu1 %v245_v14  ;;  %v255_v33 = vpack.c.bf16 %v67_v30, %v66_v29  ;;  %v86_v37 = vld [vmem:[#allocation5 + $0xe0] sm:$0xff]  ;;  %v87_v38 = vld [vmem:[#allocation5 + $0xe8] sm:$0xff]  ;;  %v259_v39 = vpack.c.bf16 %v69_v36, %v68_v35  ;;  %v88_v43 = vld [vmem:[#allocation5 + $0xf0] sm:$0xff] }
  0x42   :  { %161 = vmatprep.mubr.f32.mxu0 %v55_v25  ;;  %v261_v40 = vpack.c.bf16 %v87_v38, %v86_v37  ;;  %v70_v41 = vld [vmem:[#allocation5 + $0x60] sm:$0xff]  ;;  %v71_v42 = vld [vmem:[#allocation5 + $0x68] sm:$0xff]  ;;  %v89_v44 = vld [vmem:[#allocation5 + $0xf8] sm:$0xff] }
  0x43   :  { %v263_v45 = vpack.c.bf16 %v71_v42, %v70_v41  ;;  %v265_v46 = vpack.c.bf16 %v89_v44, %v88_v43  ;;  %v72_v47 = vld [vmem:[#allocation5 + $0x70] sm:$0xff]  ;;  %v73_v48 = vld [vmem:[#allocation5 + $0x78] sm:$0xff]  ;;  %v54_v50 = vld [vmem:[#allocation2] sm:$0xff] }
  0x44   :  { %248 = vmatpush3.bf16.msra.mxu0 %v247_v19  ;;  %279 = vmatpush3.bf16.msra.mxu1 %v247_v19  ;;  %v267_v49 = vpack.c.bf16 %v73_v48, %v72_v47  ;;  %v56_v51 = vld [vmem:[#allocation2 + $0x10] sm:$0xff]  ;;  %v198_v54 = vld [vmem:[#allocation7] ss:$0 sm:$0xff] }
  0x45   :  { %250 = vmatprep.subr.bf16.mxu0 %v249_v20  ;;  %272 = vmatprep.subr.bf16.mxu1 %v249_v20 }
  0x48   :  { %252 = vmatpush3.bf16.msra.mxu0 %v251_v27  ;;  %280 = vmatpush3.bf16.msra.mxu1 %v251_v27 }
  0x49   :  { %254 = vmatprep.subr.bf16.mxu0 %v253_v28  ;;  %273 = vmatprep.subr.bf16.mxu1 %v253_v28 }
  0x4c   :  { %256 = vmatpush3.bf16.msra.mxu0 %v255_v33  ;;  %281 = vmatpush3.bf16.msra.mxu1 %v255_v33 }
  0x4d   :  { %258 = vmatprep.subr.bf16.mxu0 %v257_v34  ;;  %274 = vmatprep.subr.bf16.mxu1 %v257_v34 }
  0x50   :  { %260 = vmatpush3.bf16.msra.mxu0 %v259_v39  ;;  %282 = vmatpush3.bf16.msra.mxu1 %v259_v39 }
  0x51   :  { %262 = vmatprep.subr.bf16.mxu0 %v261_v40  ;;  %275 = vmatprep.subr.bf16.mxu1 %v261_v40 }
  0x54   :  { %264 = vmatpush3.bf16.msra.mxu0 %v263_v45  ;;  %283 = vmatpush3.bf16.msra.mxu1 %v263_v45 }
  0x55   :  { %266 = vmatprep.subr.bf16.mxu0 %v265_v46  ;;  %276 = vmatprep.subr.bf16.mxu1 %v265_v46 }
  0x58   :  { %268 = vmatpush3.bf16.msra.mxu0 %v267_v49  ;;  %284 = vmatpush3.bf16.msra.mxu1 %v267_v49 }
  0x5b   :  { %162 = vmatmul.mubr.f32.vlgmr.msra.gmra.mrb[0].mxu0 %v54_v50  ;;  %167 = vmatmul.mubr.f32.vlgmr.msra.gmra.mrb[0].mxu1 %v56_v51 }
 0x12e   :  { %v231_v52 = vpop.f32.mrb[0].mxu0  ;;  %v234_v53 = vpop.f32.mrb[0].mxu1 }
 0x12f   :  { %v232_v55 = vpop.f32.mrb[1].mxu0  ;;  %v235_v56 = vpop.f32.mrb[1].mxu1 }
 0x130   :  { %v233_v57 = vadd.f32 %v232_v55, %v231_v52  ;;  %v236_v58 = vadd.f32 %v235_v56, %v234_v53 }
 0x132   :  { %v164_v59 = vadd.f32 %v233_v57, %v198_v54  ;;  %v169_v60 = vadd.f32 %v236_v58, %v198_v54 }
 0x134   :  { %v174_v61 = vmul.f32 0.2, %v164_v59  ;;  %v175_v62 = vmul.f32 0.2, %v169_v60  ;;  %vm172_vm0 = vcmp.ge.f32.partialorder %v164_v59, 0.0  ;;  %vm173_vm1 = vcmp.ge.f32.partialorder %v169_v60, 0.0 }
 0x136   :  { %v176_v63 = vsel %vm172_vm0, %v164_v59, %v174_v61  ;;  %v177_v0 = vsel %vm173_vm1, %v169_v60, %v175_v62 }
 0x137   :  { %178 = vst [vmem:[#allocation8] sm:$0xff] %v176_v63  ;;  %179 = vst [vmem:[#allocation8 + $0x8] sm:$0xff] %v177_v0 }
 0x138   :  { %370 = shalt.err (!%p367_p0)
}
 0x139   :  { %s371_s30 = scalar_lea.hbm %s472_s3, 256 }
 0x13a   :  { %p372_p1 = scmp.ne.s32.totalorder %s472_s3, %s371_s30  ;;  %p375_p2 = scmp.lt.u32.totalorder %s371_s30, %s472_s3 }
 0x13c   :  { %p377_p3 = pnand %p375_p2, %p372_p1 }
 0x13e   :  { %380 = shalt.err (!%p377_p3)
}
 0x13f   :  { %191 = dma.vmem_to_hbm [thread:$0]  %s186_s26, 256, %s472_s3, [#allocation4], %s388_s22, %s388_s22, %s389_s23  }
 0x140   :  { %385 = dma.done.wait [#allocation4], 256  }
 0x141   :  { %386 = vsyncadd [#allocation4], 4294967040 }
 0x142   :  { %195 = vsyncpa [#allocation3], 1 }
 0x143   :  { %196 = vsyncpa [#allocation6], 1 }
 0x144   :  { %197 = vsyncpa [#allocation4], 1 }

</bundles_post_ra>
